<compile_context>
chip_gen: v5e
topology: v5e:2x2
jax: 0.10.0
libtpu: 0.0.40
codegen_flags: <defaults>
</compile_context>

<pallas_src>
import jax
import jax.numpy as jnp
from jax.experimental import pallas as pl
from jax.experimental.pallas import tpu as pltpu

_BLOCK_ROWS = 64            # sublane rows per grid step -> 64*128 = 8192 cells
_BLOCK_CELLS = _BLOCK_ROWS * 128
_PAD_LOGIT = -1e9           # softplus(-1e9) == 0 exactly -> padding is free


def _bce_with_logits(z, t):
    # numerically-stable BCEWithLogits, elementwise (matches torch semantics)
    return jnp.maximum(z, 0.0) - z * t + jnp.log1p(jnp.exp(-jnp.abs(z)))


# --------------------------------------------------------------------------
# Pallas kernel: per-block partial sums of softplus(pred_conf)
#   (== BCE(pred_conf, 0), i.e. the no-obj conf BCE for cells with obj == 0).
# Each grid step reads a (64, 128) tile of conf logits and writes one (8,128)
# block of per-lane partial sums (no cross-lane reduce, no accumulator).
# --------------------------------------------------------------------------
def _noobj_bce_kernel(pconf_ref, out_ref):
    z = pconf_ref[...].astype(jnp.float32)                       # (64, 128)
    sp = jnp.maximum(z, 0.0) + jnp.log1p(jnp.exp(-jnp.abs(z)))   # softplus
    acc = sp[0:8, :]
    for k in range(1, _BLOCK_ROWS // 8):                         # 7 vreg adds
        acc = acc + sp[8 * k:8 * (k + 1), :]
    out_ref[...] = acc                                           # (8, 128)


def _dense_softplus_partials(pconf_rows):
    rows = pconf_rows.shape[0]
    nb = rows // _BLOCK_ROWS
    return pl.pallas_call(
        _noobj_bce_kernel,
        out_shape=jax.ShapeDtypeStruct((nb * 8, 128), jnp.float32),
        grid_spec=pltpu.PrefetchScalarGridSpec(
            num_scalar_prefetch=0,
            grid=(nb,),
            in_specs=[pl.BlockSpec((_BLOCK_ROWS, 128), lambda i: (i, 0))],
            out_specs=pl.BlockSpec((8, 128), lambda i: (i, 0)),
        ),
        compiler_params=pltpu.CompilerParams(
            dimension_semantics=("parallel",)),
    )(pconf_rows)


# --------------------------------------------------------------------------
# Plain-JAX glue: all obj-gated terms on the <= nT ground-truth cells.
# Returns the per-scale sums/counts plus the correction terms that adjust the
# kernel's dense all-cell softplus sum to the exact no-obj conf BCE sum.
# --------------------------------------------------------------------------
def _scale_obj_stats(pred, anchors_i, targets, conf_threshold):
    B, A, G, _, D = pred.shape
    C = D - 5
    nT = targets.shape[0]

    t_xy = targets[:, 1:3] * G
    t_wh = targets[:, 3:5] * G
    t_x, t_y = t_xy[:, 0], t_xy[:, 1]
    t_w, t_h = t_wh[:, 0], t_wh[:, 1]
    gi = t_x.astype(jnp.int32)
    gj = t_y.astype(jnp.int32)
    b_idx = targets[:, 0].astype(jnp.int32)
    label = targets[:, 5].astype(jnp.int32)

    w1, h1 = anchors_i[:, 0:1], anchors_i[:, 1:2]                 # (A, 1)
    inter = jnp.minimum(w1, t_w[None, :]) * jnp.minimum(h1, t_h[None, :])
    union = w1 * h1 + 1e-16 + t_w[None, :] * t_h[None, :] - inter
    iou = inter / union                                           # (A, nT)
    best_a = jnp.argmax(iou, axis=0)                              # (nT,)

    # last-write-wins dedup of targets that hit the same (b, a, gj, gi) cell
    lin = ((b_idx * A + best_a) * G + gj) * G + gi
    order = jnp.arange(nT)
    same_cell = lin[:, None] == lin[None, :]
    dup_later = same_cell & (order[None, :] > order[:, None])
    w = 1.0 - jnp.any(dup_later, axis=1).astype(jnp.float32)      # (nT,)

    # no-obj re-marking at object cells: the module sets
    #   no_obj_mask[b_j, iou[:, j] > thr, gj_j, gi_j] = True  (after clearing
    # the best anchor), so the object cell i stays no-obj iff some target j at
    # the same (b, gj, gi) has iou(best_a_i, j) > thr  (j == i included).
    same_loc = ((b_idx[:, None] == b_idx[None, :])
                & (gj[:, None] == gj[None, :])
                & (gi[:, None] == gi[None, :]))
    iou_best = iou[best_a, :]                                     # (nT, nT)
    noobj_at = jnp.any(same_loc & (iou_best > conf_threshold), axis=1)
    noobj_at = noobj_at.astype(jnp.float32)

    # gather predictions at the object cells only
    p = pred[b_idx, best_a, gj, gi, :].astype(jnp.float32)        # (nT, D)

    px = jax.nn.sigmoid(p[:, 0])
    py = jax.nn.sigmoid(p[:, 1])
    # sqrt(exp(w_logit)) == exp(0.5*w_logit); unclamped to match the module.
    # TODO(synk): the reference exp is unclamped and can overflow for extreme
    # logits; kept identical here.
    sw = jnp.exp(0.5 * p[:, 2])
    sh = jnp.exp(0.5 * p[:, 3])
    z_conf = p[:, 4]

    fx = t_x - jnp.floor(t_x)
    fy = t_y - jnp.floor(t_y)
    stw = jnp.sqrt(t_w / anchors_i[best_a, 0])
    sth = jnp.sqrt(t_h / anchors_i[best_a, 1])

    sse_coord = jnp.sum(w * ((px - fx) ** 2 + (py - fy) ** 2
                             + (sw - stw) ** 2 + (sh - sth) ** 2))

    bce1 = _bce_with_logits(z_conf, 1.0)        # conf BCE vs target 1
    bce0 = _bce_with_logits(z_conf, 0.0)        # softplus (same as kernel)
    bce_conf_obj = jnp.sum(w * bce1)

    # class targets: union of one-hots over duplicate targets in the same cell
    onehot = jax.nn.one_hot(label, C, dtype=jnp.float32)          # (nT, C)
    tcls = jnp.minimum(same_cell.astype(jnp.float32) @ onehot, 1.0)
    bce_cls = jnp.sum(w[:, None] * _bce_with_logits(p[:, 5:], tcls))

    n_obj = jnp.sum(w)
    n_cells = B * A * G * G
    n_noobj = n_cells - jnp.sum(w * (1.0 - noobj_at))

    # Exact no-obj conf BCE sum = S_all(dense softplus from the kernel)
    #   - sum_{obj cells} softplus(z)  + sum_{obj & noobj cells} BCE(z, 1)
    corr = -jnp.sum(w * bce0) + jnp.sum(w * noobj_at * bce1)

    return sse_coord, bce_conf_obj, bce_cls, n_obj, n_noobj, corr


# --------------------------------------------------------------------------
# Jitted core: one fused Pallas call over the concatenated conf logits of all
# scales + tiny per-scale gathered terms.  Returns device scalars.
# --------------------------------------------------------------------------
def _yolov3_loss_core(preds, target, anchors, conf_threshold, coord_scale,
                      no_obj_scale, obj_scale, class_scale):
    # ---- dense stream: only the conf logit of every cell, lane-dense -------
    row_parts, blk_ranges = [], []
    blk = 0
    for pred in preds:
        B, A, G, _, D = pred.shape
        N = B * A * G * G
        pconf = pred[..., 4].reshape(-1)
        n_pad = pl.cdiv(N, _BLOCK_CELLS) * _BLOCK_CELLS
        pconf = jnp.pad(pconf, (0, n_pad - N), constant_values=_PAD_LOGIT)
        row_parts.append(pconf.reshape(-1, 128))
        nb_s = n_pad // _BLOCK_CELLS
        blk_ranges.append((blk, blk + nb_s))
        blk += nb_s
    pconf_rows = jnp.concatenate(row_parts, axis=0)

    partials = _dense_softplus_partials(pconf_rows)      # (nb*8, 128)

    # ---- per-scale assembly -------------------------------------------------
    total = jnp.float32(0.0)
    coord_sum = jnp.float32(0.0)
    conf_sum = jnp.float32(0.0)
    cls_sum = jnp.float32(0.0)
    for i, pred in enumerate(preds):
        C = pred.shape[-1] - 5
        b0, b1 = blk_ranges[i]
        s_all = jnp.sum(partials[8 * b0:8 * b1])          # final lane reduce

        sse_coord, bce_obj, bce_cls, n_obj, n_noobj, corr = _scale_obj_stats(
            pred, anchors[i], target, conf_threshold)
        bce_noobj = s_all + corr

        # guard against empty-object scales (reference would NaN; return 0)
        n_obj_c = jnp.maximum(n_obj, 1.0)
        n_noobj_c = jnp.maximum(n_noobj, 1.0)
        loss_coord = coord_scale * sse_coord / n_obj_c
        loss_conf = (obj_scale * bce_obj / n_obj_c
                     + no_obj_scale * bce_noobj / n_noobj_c)
        loss_cls = class_scale * bce_cls / (n_obj_c * C)

        total = total + loss_coord + loss_conf + loss_cls
        coord_sum = coord_sum + loss_coord
        conf_sum = conf_sum + loss_conf
        cls_sum = cls_sum + loss_cls
    return total, coord_sum, conf_sum, cls_sum


_yolov3_loss_core_jit = jax.jit(_yolov3_loss_core)


def yolov3_loss(preds, target, anchors, *, conf_threshold, coord_scale,
                no_obj_scale, obj_scale, class_scale):
    total, coord, conf, cls = _yolov3_loss_core_jit(
        list(preds), target, anchors, conf_threshold, coord_scale,
        no_obj_scale, obj_scale, class_scale)
    # single host sync at the very end (matches the module's float dict)
    total, coord, conf, cls = jax.block_until_ready((total, coord, conf, cls))
    return total, {"coord": float(coord), "conf": float(conf), "cls": float(cls)}


# --------------------------------------------------------------------------
# Pure-JAX dense reference (direct replica of the PyTorch module, including
# the target construction) used only for the correctness check below.
# --------------------------------------------------------------------------
def _build_yolo_targets(pred_shape, anchors_i, targets, conf_threshold):
    B, A, G, _, D = pred_shape
    C = D - 5

    t_xy = targets[:, 1:3] * G
    t_wh = targets[:, 3:5] * G
    t_x, t_y = t_xy[:, 0], t_xy[:, 1]
    t_w, t_h = t_wh[:, 0], t_wh[:, 1]
    grid_i = t_x.astype(jnp.int32)
    grid_j = t_y.astype(jnp.int32)

    w1, h1 = anchors_i[:, 0:1], anchors_i[:, 1:2]
    inter = jnp.minimum(w1, t_w[None, :]) * jnp.minimum(h1, t_h[None, :])
    union = w1 * h1 + 1e-16 + t_w[None, :] * t_h[None, :] - inter
    iou = inter / union                                           # (A, nT)
    best_a = jnp.argmax(iou, axis=0)

    b_idx = targets[:, 0].astype(jnp.int32)
    label = targets[:, 5].astype(jnp.int32)

    size = (B, A, G, G)
    obj = jnp.zeros(size, jnp.float32).at[b_idx, best_a, grid_j, grid_i].set(1.0)
    noobj = jnp.ones(size, jnp.float32).at[b_idx, best_a, grid_j, grid_i].set(0.0)
    high = (iou.T > conf_threshold).astype(jnp.float32)           # (nT, A)
    a_idx = jnp.arange(A)[None, :]
    noobj = noobj.at[b_idx[:, None], a_idx,
                     grid_j[:, None], grid_i[:, None]].max(high)

    tx = jnp.zeros(size, jnp.float32).at[b_idx, best_a, grid_j, grid_i].set(
        t_x - jnp.floor(t_x))
    ty = jnp.zeros(size, jnp.float32).at[b_idx, best_a, grid_j, grid_i].set(
        t_y - jnp.floor(t_y))
    stw = jnp.zeros(size, jnp.float32).at[b_idx, best_a, grid_j, grid_i].set(
        jnp.sqrt(t_w / anchors_i[best_a, 0]))
    sth = jnp.zeros(size, jnp.float32).at[b_idx, best_a, grid_j, grid_i].set(
        jnp.sqrt(t_h / anchors_i[best_a, 1]))
    tcls = jnp.zeros((C,) + size, jnp.float32).at[
        label, b_idx, best_a, grid_j, grid_i].set(1.0)
    return obj, noobj, tx, ty, stw, sth, tcls


def _reference_loss(preds, target, anchors, *, conf_threshold, coord_scale,
                    no_obj_scale, obj_scale, class_scale):
    total = jnp.float32(0.0)
    for i, pred in enumerate(preds):
        B, A, G, _, D = pred.shape
        C = D - 5
        obj, noobj, tx, ty, stw, sth, tcls = _build_yolo_targets(
            pred.shape, anchors[i], target, conf_threshold)
        pred = pred.astype(jnp.float32)
        x = jax.nn.sigmoid(pred[..., 0])
        y = jax.nn.sigmoid(pred[..., 1])
        sw = jnp.exp(0.5 * (pred[..., 2] * obj))
        sh = jnp.exp(0.5 * (pred[..., 3] * obj))
        pconf = pred[..., 4]
        pcls = pred[..., 5:]
        n_obj = jnp.maximum(obj.sum(), 1.0)
        n_noobj = jnp.maximum(noobj.sum(), 1.0)

        def mse(a, b):
            return jnp.sum(((a - b) ** 2) * obj) / n_obj

        loss_coord = coord_scale * (mse(x, tx) + mse(y, ty)
                                    + mse(sw, stw) + mse(sh, sth))
        bconf = _bce_with_logits(pconf, obj)
        loss_conf = (obj_scale * jnp.sum(bconf * obj) / n_obj
                     + no_obj_scale * jnp.sum(bconf * noobj) / n_noobj)
        tcls_last = jnp.moveaxis(tcls, 0, -1)
        loss_cls = class_scale * jnp.sum(
            _bce_with_logits(pcls, tcls_last) * obj[..., None]) / (n_obj * C)
        total = total + loss_coord + loss_conf + loss_cls
    return total


if __name__ == "__main__":
    key = jax.random.PRNGKey(0)
    B, A, C = 2, 3, 8
    grids = (16, 8)
    k1, k2, k3, k4 = jax.random.split(key, 4)

    preds = [
        jax.random.normal(k1, (B, A, grids[0], grids[0], 5 + C), jnp.float32),
        jax.random.normal(k2, (B, A, grids[1], grids[1], 5 + C), jnp.float32),
    ]

    nT = 6
    b_idx = (jnp.arange(nT, dtype=jnp.float32) % B)
    xywh = jax.random.uniform(k3, (nT, 4), minval=0.05, maxval=0.95,
                              dtype=jnp.float32)
    labels = jax.random.randint(k4, (nT,), 0, C).astype(jnp.float32)
    target = jnp.concatenate([b_idx[:, None], xywh, labels[:, None]], axis=1)

    # anchors are expressed in grid-cell units, one set per scale
    anchors = jnp.array([[[1.5, 2.0], [3.5, 4.0], [6.0, 5.0]],
                         [[1.0, 1.5], [2.0, 2.5], [3.0, 3.5]]], jnp.float32)

    kwargs = dict(conf_threshold=0.5, coord_scale=1.0, no_obj_scale=100.0,
                  obj_scale=1.0, class_scale=1.0)

    loss, parts = yolov3_loss(preds, target, anchors, **kwargs)
    loss = jax.block_until_ready(loss)

    ref = float(_reference_loss(preds, target, anchors, **kwargs))
    got = float(loss)
    assert abs(got - ref) <= 1e-3 * max(1.0, abs(ref)), (got, ref)
    print("KERNEL_OK")
</pallas_src>

<mosaic_0001>
module attributes {stable_mosaic.version = 11 : i64} {
  func.func @_noobj_bce_kernel(%arg0: i32, %arg1: memref<64x128xf32, #tpu.memory_space<vmem>>, %arg2: memref<8x128xf32, #tpu.memory_space<vmem>>) attributes {dimension_semantics = [#tpu.dimension_semantics<parallel>], iteration_bounds = array<i64: 2>, scalar_prefetch = 0 : i64, scratch_operands = 0 : i64, tpu.core_type = #tpu.core_type<tc>, window_params = [{transform_indices = @transform_0, window_bounds = array<i64: 64, 128>}, {transform_indices = @transform_1, window_bounds = array<i64: 8, 128>}]} {
    %c0 = arith.constant 0 : index
    %c0_0 = arith.constant 0 : index
    %0 = vector.load %arg1[%c0, %c0_0] : memref<64x128xf32, #tpu.memory_space<vmem>>, vector<64x128xf32>
    %cst = arith.constant 0.000000e+00 : f32
    %1 = vector.broadcast %cst : f32 to vector<64x128xf32>
    %2 = arith.maximumf %0, %1 : vector<64x128xf32>
    %3 = math.absf %0 : vector<64x128xf32>
    %cst_1 = arith.constant 0.000000e+00 : f32
    %4 = vector.broadcast %cst_1 : f32 to vector<64x128xf32>
    %5 = arith.subf %4, %3 : vector<64x128xf32>
    %6 = math.exp %5 : vector<64x128xf32>
    %7 = math.log1p %6 : vector<64x128xf32>
    %8 = arith.addf %2, %7 : vector<64x128xf32>
    %9 = vector.extract_strided_slice %8 {offsets = [0, 0], sizes = [8, 128], strides = [1, 1]} : vector<64x128xf32> to vector<8x128xf32>
    %10 = vector.extract_strided_slice %8 {offsets = [8, 0], sizes = [8, 128], strides = [1, 1]} : vector<64x128xf32> to vector<8x128xf32>
    %11 = arith.addf %9, %10 : vector<8x128xf32>
    %12 = vector.extract_strided_slice %8 {offsets = [16, 0], sizes = [8, 128], strides = [1, 1]} : vector<64x128xf32> to vector<8x128xf32>
    %13 = arith.addf %11, %12 : vector<8x128xf32>
    %14 = vector.extract_strided_slice %8 {offsets = [24, 0], sizes = [8, 128], strides = [1, 1]} : vector<64x128xf32> to vector<8x128xf32>
    %15 = arith.addf %13, %14 : vector<8x128xf32>
    %16 = vector.extract_strided_slice %8 {offsets = [32, 0], sizes = [8, 128], strides = [1, 1]} : vector<64x128xf32> to vector<8x128xf32>
    %17 = arith.addf %15, %16 : vector<8x128xf32>
    %18 = vector.extract_strided_slice %8 {offsets = [40, 0], sizes = [8, 128], strides = [1, 1]} : vector<64x128xf32> to vector<8x128xf32>
    %19 = arith.addf %17, %18 : vector<8x128xf32>
    %20 = vector.extract_strided_slice %8 {offsets = [48, 0], sizes = [8, 128], strides = [1, 1]} : vector<64x128xf32> to vector<8x128xf32>
    %21 = arith.addf %19, %20 : vector<8x128xf32>
    %22 = vector.extract_strided_slice %8 {offsets = [56, 0], sizes = [8, 128], strides = [1, 1]} : vector<64x128xf32> to vector<8x128xf32>
    %23 = arith.addf %21, %22 : vector<8x128xf32>
    %c0_2 = arith.constant 0 : index
    %c0_3 = arith.constant 0 : index
    %24 = vector.load %arg2[%c0_2, %c0_3] : memref<8x128xf32, #tpu.memory_space<vmem>>, vector<8x128xf32>
    tpu.vector_store %arg2[%c0_2, %c0_3], %23 {strides = array<i32>} : memref<8x128xf32, #tpu.memory_space<vmem>>, vector<8x128xf32>,
    return
  }
  func.func @transform_0(%arg0: i32) -> (i32, i32) {
    %c0_i32 = arith.constant 0 : i32
    %c0_i32_0 = arith.constant 0 : i32
    return %arg0, %c0_i32 : i32, i32
  }
  func.func @transform_1(%arg0: i32) -> (i32, i32) {
    %c0_i32 = arith.constant 0 : i32
    %c0_i32_0 = arith.constant 0 : i32
    return %arg0, %c0_i32 : i32, i32
  }
}

</mosaic_0001>

<bundles_post_ra>
// kernel: squeeze.35
= control target key start
LH: loop header
LB: loop body
LE: loop exit
PB: predicated region body
PF: predicated region fallthrough
CT: control target
= control target key end

     0   :  { %vm6_vm0 = vcmask 1042434   ;;  %s11_s6 = smov 3  ;;  %s33_s11 = smov 3  ;;  %vm8_vm1 = vcmask 64512   ;;  %vm19_vm2 = vcmask 1048512   ;;  %vm30_vm3 = vcmask 982912   ;;  %s367_s0 = inlined_call_operand.vmem [shape: f32[2,3,8,8], index: 0, kind: input, shape index: {}]   ;;  %s368_s1 = inlined_call_operand.vmem [shape: f32[384], index: 1, kind: output, shape index: {}]  }
   0x1   :  { %v183_v0 = vld [vmem:[%s367_s0 + $0x2d] sm:$0x4]   ;;  %v187_v2 = vld [vmem:[%s367_s0 + $0x2b] sm:$0x4]   ;;  %s22_s16 = smov 3  ;;  %s227_s17 = smov 120  }
   0x2   :  { %v182_v1 = vld [vmem:[%s367_s0 + $0xf] ss:$16 sm:%s11_s6]   ;;  %v186_v4 = vld [vmem:[%s367_s0 + $0xd] ss:$16 sm:%s33_s11]   ;;  %s44_s18 = smov 3  ;;  %s228_s19 = smov 104  }
   0x3   :  { %v16_v3 = vsel %vm6_vm0, %v183_v0, %v182_v1  ;;  %v38_v5 = vsel %vm6_vm0, %v187_v2, %v186_v4  ;;  %v184_v6 = vld [vmem:[%s367_s0 + $0xe] ss:$16 sm:%s22_s16]   ;;  %v188_v8 = vld [vmem:[%s367_s0 + $0xc] ss:$16 sm:%s44_s18]   ;;  %s55_s28 = smov 3  ;;  %s77_s2 = smov 3 }
   0x4   :  { %17 = vrot.lane.b32.xlu0 %v16_v3, %s227_s17  ;;  %39 = vrot.lane.b32.xlu1 %v38_v5, %s228_s19  ;;  %v185_v7 = vld [vmem:[%s367_s0 + $0x2c] sm:$0x4]   ;;  %v189_v9 = vld [vmem:[%s367_s0 + $0x2a] sm:$0x4]   ;;  %s229_s5 = smov 112   ;;  %s88_s6 = smov 3 }
   0x5   :  { %v27_v10 = vsel %vm6_vm0, %v185_v7, %v184_v6  ;;  %v191_v11 = vld [vmem:[%s367_s0 + $0x29] sm:$0x4]   ;;  %v49_v12 = vsel %vm6_vm0, %v189_v9, %v188_v8  ;;  %s230_s7 = smov 88   ;;  %s66_s8 = smov 3  ;;  %v194_v15 = vld [vmem:[%s367_s0 + $0x9] ss:$16 sm:%s77_s2]  }
   0x6   :  { %v190_v13 = vld [vmem:[%s367_s0 + $0xb] ss:$16 sm:%s55_s28]   ;;  %s231_s9 = smov 96   ;;  %v195_v16 = vld [vmem:[%s367_s0 + $0x27] sm:$0x4]   ;;  %s110_s22 = smov 3 }
   0x7   :  { %v60_v14 = vsel %vm6_vm0, %v191_v11, %v190_v13  ;;  %v192_v17 = vld [vmem:[%s367_s0 + $0xa] ss:$16 sm:%s66_s8]   ;;  %v196_v19 = vld [vmem:[%s367_s0 + $0x8] ss:$16 sm:%s88_s6]   ;;  %v82_v21 = vsel %vm6_vm0, %v195_v16, %v194_v15  ;;  %s99_s23 = smov 3  ;;  %s232_s24 = smov 72  }
   0x8   :  { %61 = vrot.lane.b32.xlu2 %v60_v14, %s230_s7  ;;  %v193_v18 = vld [vmem:[%s367_s0 + $0x28] sm:$0x4]   ;;  %v197_v20 = vld [vmem:[%s367_s0 + $0x26] sm:$0x4]   ;;  %s121_s25 = smov 3  ;;  %s233_s26 = smov 80  }
   0x9   :  { %v71_v22 = vsel %vm6_vm0, %v193_v18, %v192_v17  ;;  %v93_v23 = vsel %vm6_vm0, %v197_v20, %v196_v19  ;;  %s234_s27 = smov 64   ;;  %v200_v24 = vld [vmem:[%s367_s0 + $0x6] ss:$16 sm:%s110_s22]   ;;  %v198_v26 = vld [vmem:[%s367_s0 + $0x7] ss:$16 sm:%s99_s23]   ;;  %s143_s11 = smov 3 }
   0xa   :  { %v201_v25 = vld [vmem:[%s367_s0 + $0x24] sm:$0x4]   ;;  %v199_v27 = vld [vmem:[%s367_s0 + $0x25] sm:$0x4]   ;;  %v202_v28 = vld [vmem:[%s367_s0 + $0x5] ss:$16 sm:%s121_s25]  }
   0xb   :  { %v203_v29 = vld [vmem:[%s367_s0 + $0x23] sm:$0x4]   ;;  %v115_v30 = vsel %vm6_vm0, %v201_v25, %v200_v24  ;;  %v104_v31 = vsel %vm6_vm0, %v199_v27, %v198_v26  ;;  %s132_s12 = smov 3  ;;  %s235_s13 = smov 48   ;;  %v206_v33 = vld [vmem:[%s367_s0 + $0x3] ss:$16 sm:%s143_s11]  }
   0xc   :  { %28 = vrot.lane.b32.xlu0 %v27_v10, %s229_s5  ;;  %50 = vrot.lane.b32.xlu1 %v49_v12, %s231_s9  ;;  %v126_v32 = vsel %vm6_vm0, %v203_v29, %v202_v28  ;;  %s154_s14 = smov 3  ;;  %s236_s15 = smov 56   ;;  %v207_v34 = vld [vmem:[%s367_s0 + $0x21] sm:$0x4]   ;;  %v205_v36 = vld [vmem:[%s367_s0 + $0x22] sm:$0x4]  }
   0xd   :  { %s237_s16 = smov 40   ;;  %v204_v35 = vld [vmem:[%s367_s0 + $0x4] ss:$16 sm:%s132_s12]   ;;  %v208_v37 = vld [vmem:[%s367_s0 + $0x2] ss:$16 sm:%s154_s14]   ;;  %v148_v39 = vsel %vm6_vm0, %v207_v34, %v206_v33  ;;  %s165_s29 = smov 3 }
   0xe   :  { %v209_v38 = vld [vmem:[%s367_s0 + $0x20] sm:$0x4]   ;;  %v137_v40 = vsel %vm6_vm0, %v205_v36, %v204_v35  ;;  %s238_s30 = smov 24   ;;  %s239_s2 = smov 32   ;;  %v210_v42 = vld [vmem:[%s367_s0 + $0x1] ss:$16 sm:%s165_s29]  }
   0xf   :  { %v159_v41 = vsel %vm6_vm0, %v209_v38, %v208_v37  ;;  %s240_s3 = smov 16   ;;  %v211_v43 = vld [vmem:[%s367_s0 + $0x1f] sm:$0x4]   ;;  %s241_s8 = smov 8   ;;  %v181_v46 = vld [vmem:[%s367_s0 + $0x1e] sm:$0x4]  }
  0x10   :  { %72 = vrot.lane.b32.xlu2 %v71_v22, %s233_s26  ;;  %v170_v44 = vsel %vm6_vm0, %v211_v43, %v210_v42  ;;  %s2_s9 = smov 3  ;;  %vm41_vm4 = vcmask 917312   ;;  %vm52_vm5 = vcmask 851712   ;;  %vm63_vm6 = vcmask 786112  }
  0x11   :  { %v3_v45 = vld [vmem:[%s367_s0] ss:$16 sm:%s2_s9]   ;;  %vm74_vm7 = vcmask 720512   ;;  %vm85_vm8 = vcmask 654912   ;;  %vm96_vm9 = vcmask 589312   ;;  %vm107_vm10 = vcmask 523712  }
  0x12   :  { %v7_v47 = vsel %vm6_vm0, %v181_v46, %v3_v45  ;;  %vm118_vm11 = vcmask 458112   ;;  %vm129_vm12 = vcmask 392512   ;;  %vm140_vm13 = vcmask 326912  }
  0x13   :  { %9 = vst.msk [vmem:[#allocation0] sm:$0x7] %vm8_vm1, %v7_v47   ;;  %vm151_vm14 = vcmask 261312   ;;  %vm162_vm15 = vcmask 195712   ;;  %vm173_vm0 = vcmask 130112  }
  0x14   :  { %83 = vrot.lane.b32.xlu0 %v82_v21, %s232_s24  ;;  %94 = vrot.lane.b32.xlu1 %v93_v23, %s234_s27 }
  0x18   :  { %105 = vrot.lane.b32.xlu2 %v104_v31, %s236_s15 }
  0x1c   :  { %116 = vrot.lane.b32.xlu0 %v115_v30, %s235_s13  ;;  %127 = vrot.lane.b32.xlu1 %v126_v32, %s237_s16 }
  0x20   :  { %138 = vrot.lane.b32.xlu2 %v137_v40, %s239_s2 }
  0x24   :  { %149 = vrot.lane.b32.xlu0 %v148_v39, %s238_s30  ;;  %160 = vrot.lane.b32.xlu1 %v159_v41, %s240_s3 }
  0x28   :  { %171 = vrot.lane.b32.xlu2 %v170_v44, %s241_s8 }
  0x62   :  { %v62_v48 = vpop.permute.xlu2 %61  }
  0x6a   :  { %v73_v49 = vpop.permute.xlu2 %72  }
  0x72   :  { %v106_v51 = vpop.permute.xlu2 %105  }
  0x76   :  { %v18_v50 = vpop.permute.xlu0 %17   ;;  %v40_v52 = vpop.permute.xlu1 %39  }
  0x77   :  { %20 = vst.msk [vmem:[#allocation0] sm:$0x7] %vm19_vm2, %v18_v50  }
  0x7a   :  { %v139_v54 = vpop.permute.xlu2 %138  }
  0x7e   :  { %v29_v53 = vpop.permute.xlu0 %28   ;;  %v51_v55 = vpop.permute.xlu1 %50  }
  0x7f   :  { %31 = vst.msk [vmem:[#allocation0] sm:$0x7] %vm30_vm3, %v29_v53  }
  0x80   :  { %42 = vst.msk [vmem:[#allocation0] sm:$0x7] %vm41_vm4, %v40_v52  }
  0x81   :  { %53 = vst.msk [vmem:[#allocation0] sm:$0x7] %vm52_vm5, %v51_v55  }
  0x82   :  { %64 = vst.msk [vmem:[#allocation0] sm:$0x7] %vm63_vm6, %v62_v48   ;;  %v172_v57 = vpop.permute.xlu2 %171  }
  0x83   :  { %75 = vst.msk [vmem:[#allocation0] sm:$0x7] %vm74_vm7, %v73_v49  }
  0x86   :  { %v84_v56 = vpop.permute.xlu0 %83   ;;  %v95_v58 = vpop.permute.xlu1 %94  }
  0x87   :  { %86 = vst.msk [vmem:[#allocation0] sm:$0x7] %vm85_vm8, %v84_v56  }
  0x88   :  { %97 = vst.msk [vmem:[#allocation0] sm:$0x7] %vm96_vm9, %v95_v58  }
  0x89   :  { %108 = vst.msk [vmem:[#allocation0] sm:$0x7] %vm107_vm10, %v106_v51  }
  0x8e   :  { %v117_v59 = vpop.permute.xlu0 %116   ;;  %v128_v60 = vpop.permute.xlu1 %127  }
  0x8f   :  { %119 = vst.msk [vmem:[#allocation0] sm:$0x7] %vm118_vm11, %v117_v59  }
  0x90   :  { %130 = vst.msk [vmem:[#allocation0] sm:$0x7] %vm129_vm12, %v128_v60  }
  0x91   :  { %141 = vst.msk [vmem:[#allocation0] sm:$0x7] %vm140_vm13, %v139_v54  }
  0x96   :  { %v150_v61 = vpop.permute.xlu0 %149   ;;  %v161_v62 = vpop.permute.xlu1 %160  }
  0x97   :  { %152 = vst.msk [vmem:[#allocation0] sm:$0x7] %vm151_vm14, %v150_v61  }
  0x98   :  { %163 = vst.msk [vmem:[#allocation0] sm:$0x7] %vm162_vm15, %v161_v62  }
  0x99   :  { %174 = vst.msk [vmem:[#allocation0] sm:$0x7] %vm173_vm0, %v172_v57  }
  0xa0   :  { %v177_v63 = vld [vmem:[#allocation0] sm:$0xf] }
  0xa1   :  { %180 = vst [vmem:[%s368_s1] sm:$0xf] %v177_v63 }

// kernel: squeeze.34
= control target key start
LH: loop header
LB: loop body
LE: loop exit
PB: predicated region body
PF: predicated region fallthrough
CT: control target
= control target key end

     0   :  { %vm4_vm0 = vcmask 1047556   ;;  %s169_s14 = smov 96   ;;  %s170_s15 = smov 112   ;;  %vm6_vm1 = vcmask 130048   ;;  %vm21_vm2 = vcmask 1048448   ;;  %vm38_vm3 = vcmask 917248   ;;  %s314_s0 = inlined_call_operand.vmem [shape: f32[2,3,16,16,1], index: 0, kind: input, shape index: {}]   ;;  %s315_s1 = inlined_call_operand.vmem [shape: f32[1536], index: 1, kind: output, shape index: {}]  }
   0x1   :  { %v138_v0 = vld [vmem:[%s314_s0 + $0x6] ss:$8 sm:$0xf]   ;;  %v134_v3 = vld [vmem:[%s314_s0 + $0x7] ss:$8 sm:$0xf]  }
   0x2   :  { %v139_v1 = vld [vmem:[%s314_s0 + $0x6] ss:$8 sm:$0xf0]   ;;  %v135_v4 = vld [vmem:[%s314_s0 + $0x7] ss:$8 sm:$0xf0]  }
   0x3   :  { %v35_v2 = vsel %vm4_vm0, %v139_v1, %v138_v0  ;;  %v18_v5 = vsel %vm4_vm0, %v135_v4, %v134_v3  ;;  %v140_v6 = vld [vmem:[%s314_s0 + $0x46] ss:$8 sm:$0xf]   ;;  %v142_v7 = vld [vmem:[%s314_s0 + $0x5] ss:$8 sm:$0xf]  }
   0x4   :  { %36 = vrot.lane.b32.xlu1 %v35_v2, %s169_s14  ;;  %19 = vrot.lane.b32.xlu0 %v18_v5, %s170_s15  ;;  %v143_v8 = vld [vmem:[%s314_s0 + $0x5] ss:$8 sm:$0xf0]   ;;  %v136_v9 = vld [vmem:[%s314_s0 + $0x47] ss:$8 sm:$0xf]  }
   0x5   :  { %v52_v10 = vsel %vm4_vm0, %v143_v8, %v142_v7  ;;  %s171_s24 = smov 80   ;;  %v146_v11 = vld [vmem:[%s314_s0 + $0x4] ss:$8 sm:$0xf]   ;;  %s172_s4 = smov 64   ;;  %vm55_vm4 = vcmask 786048  }
   0x6   :  { %53 = vrot.lane.b32.xlu2 %v52_v10, %s171_s24  ;;  %v147_v12 = vld [vmem:[%s314_s0 + $0x4] ss:$8 sm:$0xf0]   ;;  %v144_v13 = vld [vmem:[%s314_s0 + $0x45] ss:$8 sm:$0xf]  }
   0x7   :  { %v148_v14 = vld [vmem:[%s314_s0 + $0x44] ss:$8 sm:$0xf]   ;;  %v69_v15 = vsel %vm4_vm0, %v147_v12, %v146_v11  ;;  %v150_v16 = vld [vmem:[%s314_s0 + $0x3] ss:$8 sm:$0xf]  }
   0x8   :  { %v151_v17 = vld [vmem:[%s314_s0 + $0x3] ss:$8 sm:$0xf0]   ;;  %v154_v18 = vld [vmem:[%s314_s0 + $0x2] ss:$8 sm:$0xf]  }
   0x9   :  { %v155_v19 = vld [vmem:[%s314_s0 + $0x2] ss:$8 sm:$0xf0]   ;;  %v86_v20 = vsel %vm4_vm0, %v151_v17, %v150_v16  ;;  %v152_v22 = vld [vmem:[%s314_s0 + $0x43] ss:$8 sm:$0xf]  }
   0xa   :  { %v103_v21 = vsel %vm4_vm0, %v155_v19, %v154_v18  ;;  %s174_s16 = smov 32   ;;  %v158_v23 = vld [vmem:[%s314_s0 + $0x1] ss:$8 sm:$0xf]   ;;  %s175_s25 = smov 16   ;;  %vm72_vm5 = vcmask 654848  }
   0xb   :  { %v159_v24 = vld [vmem:[%s314_s0 + $0x1] ss:$8 sm:$0xf0]   ;;  %v156_v25 = vld [vmem:[%s314_s0 + $0x42] ss:$8 sm:$0xf]  }
   0xc   :  { %42 = vrot.lane.b32.xlu1 %v140_v6, %s169_s14  ;;  %25 = vrot.lane.b32.xlu0 %v136_v9, %s170_s15  ;;  %s173_s15 = smov 48   ;;  %v160_v26 = vld [vmem:[%s314_s0 + $0x41] ss:$8 sm:$0xf]   ;;  %v120_v27 = vsel %vm4_vm0, %v159_v24, %v158_v23  ;;  %vm89_vm6 = vcmask 523648   ;;  %vm106_vm7 = vcmask 392448  }
   0xd   :  { %v2_v28 = vld [vmem:[%s314_s0] ss:$8 sm:$0xf]   ;;  %vm123_vm8 = vcmask 261248  }
   0xe   :  { %59 = vrot.lane.b32.xlu2 %v144_v13, %s171_s24  ;;  %v3_v29 = vld [vmem:[%s314_s0] ss:$8 sm:$0xf0]  }
   0xf   :  { %v5_v30 = vsel %vm4_vm0, %v3_v29, %v2_v28  ;;  %v132_v31 = vld [vmem:[%s314_s0 + $0x40] ss:$8 sm:$0xf]  }
  0x10   :  { %7 = vst.msk [vmem:[%s315_s1] sm:$0xff] %vm6_vm1, %v5_v30  }
  0x11   :  { %133 = vst.msk [vmem:[%s315_s1 + $0x8] sm:$0xf] %vm6_vm1, %v132_v31  }
  0x14   :  { %76 = vrot.lane.b32.xlu1 %v148_v14, %s172_s4  ;;  %70 = vrot.lane.b32.xlu0 %v69_v15, %s172_s4 }
  0x16   :  { %87 = vrot.lane.b32.xlu2 %v86_v20, %s173_s15 }
  0x1c   :  { %104 = vrot.lane.b32.xlu1 %v103_v21, %s174_s16  ;;  %93 = vrot.lane.b32.xlu0 %v152_v22, %s173_s15 }
  0x1e   :  { %110 = vrot.lane.b32.xlu2 %v156_v25, %s174_s16 }
  0x24   :  { %127 = vrot.lane.b32.xlu1 %v160_v26, %s175_s25  ;;  %121 = vrot.lane.b32.xlu0 %v120_v27, %s175_s25 }
  0x60   :  { %v54_v32 = vpop.permute.xlu2 %53  }
  0x68   :  { %v60_v33 = vpop.permute.xlu2 %59  }
  0x70   :  { %v88_v34 = vpop.permute.xlu2 %87  }
  0x76   :  { %v37_v35 = vpop.permute.xlu1 %36   ;;  %v20_v36 = vpop.permute.xlu0 %19  }
  0x77   :  { %22 = vst.msk [vmem:[%s315_s1] sm:$0xff] %vm21_vm2, %v20_v36  }
  0x78   :  { %39 = vst.msk [vmem:[%s315_s1] sm:$0xff] %vm38_vm3, %v37_v35   ;;  %v111_v37 = vpop.permute.xlu2 %110  }
  0x79   :  { %56 = vst.msk [vmem:[%s315_s1] sm:$0xff] %vm55_vm4, %v54_v32  }
  0x7e   :  { %v43_v38 = vpop.permute.xlu1 %42   ;;  %v26_v39 = vpop.permute.xlu0 %25  }
  0x7f   :  { %137 = vst.msk [vmem:[%s315_s1 + $0x8] sm:$0xf] %vm21_vm2, %v26_v39  }
  0x80   :  { %141 = vst.msk [vmem:[%s315_s1 + $0x8] sm:$0xf] %vm38_vm3, %v43_v38  }
  0x81   :  { %145 = vst.msk [vmem:[%s315_s1 + $0x8] sm:$0xf] %vm55_vm4, %v60_v33  }
  0x86   :  { %v77_v40 = vpop.permute.xlu1 %76   ;;  %v71_v41 = vpop.permute.xlu0 %70  }
  0x87   :  { %149 = vst.msk [vmem:[%s315_s1 + $0x8] sm:$0xf] %vm72_vm5, %v77_v40  }
  0x88   :  { %73 = vst.msk [vmem:[%s315_s1] sm:$0xff] %vm72_vm5, %v71_v41  }
  0x89   :  { %90 = vst.msk [vmem:[%s315_s1] sm:$0xff] %vm89_vm6, %v88_v34  }
  0x8e   :  { %v105_v42 = vpop.permute.xlu1 %104   ;;  %v94_v43 = vpop.permute.xlu0 %93  }
  0x8f   :  { %107 = vst.msk [vmem:[%s315_s1] sm:$0xff] %vm106_vm7, %v105_v42  }
  0x90   :  { %153 = vst.msk [vmem:[%s315_s1 + $0x8] sm:$0xf] %vm89_vm6, %v94_v43  }
  0x91   :  { %157 = vst.msk [vmem:[%s315_s1 + $0x8] sm:$0xf] %vm106_vm7, %v111_v37  }
  0x96   :  { %v128_v44 = vpop.permute.xlu1 %127   ;;  %v122_v45 = vpop.permute.xlu0 %121  }
  0x97   :  { %161 = vst.msk [vmem:[%s315_s1 + $0x8] sm:$0xf] %vm123_vm8, %v128_v44  }
  0x98   :  { %124 = vst.msk [vmem:[%s315_s1] sm:$0xff] %vm123_vm8, %v122_v45  }

// kernel: _yolov3_loss_core.1
= control target key start
LH: loop header
LB: loop body
LE: loop exit
PB: predicated region body
PF: predicated region fallthrough
CT: control target
= control target key end

     0   :  { %s374_s6 = smov 0   ;;  %s486_s0 = inlined_call_operand.vmem [shape: f32[128,128], index: 0, kind: input, shape index: {}]   ;;  %s487_s1 = inlined_call_operand.vmem [shape: f32[16,128], index: 1, kind: output, shape index: {}]  }
   0x1 LB: > { %s380_s7 = sadd.s32 4294967295, %s362_s6   ;;  %p310_p0 = scmp.ge.s32.totalorder %s362_s6, 1  ;;  %s362_s6 = sphi %s374_s6, %s11_s6  }
   0x2   : > { %p88_p1 = scmp.lt.s32.totalorder %s362_s6, 3 }
   0x4   : > { %p89_p2 = pnand %p310_p0, %p88_p1 }
   0x5   : > { %s311_s8 = sshll.u32 (!%p89_p2), %s380_s7, 3  ;;  %p113_p4 = scmp.lt.s32.totalorder (!%p89_p2), %s380_s7, 1 }
   0x6   : > { %92 = sbr.rel (%p89_p2) target bundleno = 62 (0x3e), region = 24  ;;  %p108_p3 = scmp.lt.s32.totalorder (!%p89_p2), %s311_s8, 15 }
   0xb   : > { %s501_s8 = smov (!%p108_p3, %s311_s8), 15  ;;  %s503_s7 = smov (!%p113_p4, %s380_s7), 1 }
   0xc   : > { %s312_s9 = sshll.u32 %s501_s8, 3  ;;  %s313_s13 = sshll.u32 %s503_s7, 3 }
   0xd   : > { %s111_s12 = scalar_lea.vmem %s486_s0, %s312_s9  ;;  %s116_s16 = scalar_lea.vmem %s487_s1, %s313_s13 }
   0xe   : > { %v388_v0 = vld [vmem:[%s111_s12] sm:$0xff]  ;;  %v390_v1 = vld [vmem:[%s111_s12 + $0x8] sm:$0xff]  ;;  %v392_v2 = vld [vmem:[%s111_s12 + $0x10] sm:$0xff] }
   0xf   : > { %v394_v3 = vld [vmem:[%s111_s12 + $0x18] sm:$0xff]  ;;  %v396_v4 = vld [vmem:[%s111_s12 + $0x20] sm:$0xff]  ;;  %v398_v5 = vld [vmem:[%s111_s12 + $0x28] sm:$0xff]  ;;  %v133_v8 = vand.u32 2147483647, %v388_v0  ;;  %v125_v33 = vmax.f32 %v388_v0, 0.0 }
  0x10   : > { %v400_v6 = vld [vmem:[%s111_s12 + $0x30] sm:$0xff]  ;;  %v402_v7 = vld [vmem:[%s111_s12 + $0x38] sm:$0xff]  ;;  %v134_v9 = vand.u32 2147483647, %v390_v1  ;;  %v135_v10 = vand.u32 2147483647, %v392_v2 }
  0x11   : > { %v136_v11 = vand.u32 2147483647, %v394_v3  ;;  %v137_v12 = vand.u32 2147483647, %v396_v4  ;;  %v138_v13 = vand.u32 2147483647, %v398_v5 }
  0x12   : > { %v139_v14 = vand.u32 2147483647, %v400_v6  ;;  %v140_v15 = vand.u32 2147483647, %v402_v7  ;;  %v141_v16 = vsub.f32 0.0, %v133_v8  ;;  %v142_v17 = vsub.f32 0.0, %v134_v9 }
  0x13   : > { %v143_v18 = vsub.f32 0.0, %v135_v10  ;;  %v144_v19 = vsub.f32 0.0, %v136_v11  ;;  %v145_v20 = vsub.f32 0.0, %v137_v12  ;;  %v146_v21 = vsub.f32 0.0, %v138_v13 }
  0x14   : > { %v149_v22 = vmul.f32 1.442695, %v141_v16  ;;  %v151_v23 = vmul.f32 1.442695, %v142_v17  ;;  %v147_v25 = vsub.f32 0.0, %v139_v14  ;;  %v148_v27 = vsub.f32 0.0, %v140_v15 }
  0x15   : > { %v153_v24 = vmul.f32 1.442695, %v143_v18  ;;  %v155_v26 = vmul.f32 1.442695, %v144_v19  ;;  %v157_v28 = vmul.f32 1.442695, %v145_v20 }
  0x16   : > { %324 = vpow2.f32 %v149_v22  ;;  %v159_v29 = vmul.f32 1.442695, %v146_v21  ;;  %v161_v30 = vmul.f32 1.442695, %v147_v25  ;;  %v163_v31 = vmul.f32 1.442695, %v148_v27 }
  0x17   : > { %326 = vpow2.f32 %v151_v23  ;;  %v126_v39 = vmax.f32 %v390_v1, 0.0  ;;  %v127_v43 = vmax.f32 %v392_v2, 0.0  ;;  %v128_v50 = vmax.f32 %v394_v3, 0.0 }
  0x18   : > { %328 = vpow2.f32 %v153_v24 }
  0x19   : > { %330 = vpow2.f32 %v155_v26 }
  0x1a   : > { %332 = vpow2.f32 %v157_v28 }
  0x1b   : > { %334 = vpow2.f32 %v159_v29 }
  0x1c   : > { %v325_v32 = vpop.eup %324  ;;  %336 = vpow2.f32 %v161_v30 }
  0x1d   : > { %v327_v34 = vpop.eup %326  ;;  %v165_v35 = vadd.f32 1.0, %v325_v32  ;;  %v168_v36 = vmul.f32 -0.5, %v325_v32  ;;  %v171_v37 = vand.u32 2147483647, %v325_v32  ;;  %338 = vpow2.f32 %v163_v31 }
  0x1e   : > { %v329_v38 = vpop.eup %328  ;;  %v174_v40 = vadd.f32 1.0, %v327_v34  ;;  %v177_v41 = vmul.f32 -0.5, %v327_v34  ;;  %v180_v44 = vand.u32 2147483647, %v327_v34 }
  0x1f   : > { %v331_v42 = vpop.eup %330  ;;  %340 = vlog2.f32 %v165_v35  ;;  %v183_v45 = vadd.f32 1.0, %v329_v38  ;;  %v169_v47 = vadd.f32 1.0, %v168_v36  ;;  %v186_v49 = vmul.f32 -0.5, %v329_v38 }
  0x20   : > { %v333_v46 = vpop.eup %332  ;;  %342 = vlog2.f32 %v174_v40  ;;  %v178_v48 = vadd.f32 1.0, %v177_v41  ;;  %vm416_vm0 = vcmp.lt.f32.partialorder %v171_v37, 0.0004427343  ;;  %v192_v52 = vadd.f32 1.0, %v331_v42 }
  0x21   : > { %344 = vlog2.f32 %v183_v45  ;;  %v335_v53 = vpop.eup %334  ;;  %v187_v54 = vadd.f32 1.0, %v186_v49  ;;  %v189_v55 = vand.u32 2147483647, %v329_v38  ;;  %v195_v56 = vmul.f32 -0.5, %v331_v42 }
  0x22   : > { %v198_v57 = vand.u32 2147483647, %v331_v42  ;;  %v420_v58 = vpop.eup %336  ;;  %vm422_vm1 = vcmp.lt.f32.partialorder %v180_v44, 0.0004427343  ;;  %346 = vlog2.f32 %v192_v52  ;;  %v201_v60 = vadd.f32 1.0, %v333_v46 }
  0x23   : > { %v204_v61 = vmul.f32 -0.5, %v333_v46  ;;  %v426_v62 = vpop.eup %338  ;;  %v170_v63 = vmul.f32 %v325_v32, %v169_v47  ;;  %v179_v8 = vmul.f32 %v327_v34, %v178_v48  ;;  %v196_v9 = vadd.f32 1.0, %v195_v56 }
  0x24   : > { %v207_v10 = vand.u32 2147483647, %v333_v46  ;;  %348 = vlog2.f32 %v201_v60  ;;  %v210_v13 = vadd.f32 1.0, %v335_v53  ;;  %v213_v14 = vmul.f32 -0.5, %v335_v53 }
  0x25   : > { %v341_v11 = vpop.eup %340  ;;  %v205_v12 = vadd.f32 1.0, %v204_v61  ;;  %v188_v17 = vmul.f32 %v329_v38, %v187_v54  ;;  %vm428_vm2 = vcmp.lt.f32.partialorder %v189_v55, 0.0004427343  ;;  %vm432_vm3 = vcmp.lt.f32.partialorder %v198_v57, 0.0004427343 }
  0x26   : > { %v343_v15 = vpop.eup %342  ;;  %v167_v16 = vmul.f32 0.6931472, %v341_v11  ;;  %vm436_vm4 = vcmp.lt.f32.partialorder %v207_v10, 0.0004427343  ;;  %350 = vlog2.f32 %v210_v13  ;;  %v214_v23 = vadd.f32 1.0, %v213_v14 }
  0x27   : > { %v345_v20 = vpop.eup %344  ;;  %v176_v21 = vmul.f32 0.6931472, %v343_v15  ;;  %v197_v25 = vmul.f32 %v331_v42, %v196_v9  ;;  %v216_v26 = vand.u32 2147483647, %v335_v53  ;;  %v219_v27 = vadd.f32 1.0, %v420_v58 }
  0x28   : > { %v185_v24 = vmul.f32 0.6931472, %v345_v20  ;;  %v347_v28 = vpop.eup %346  ;;  %v173_v29 = vsel %vm416_vm0, %v170_v63, %v167_v16  ;;  %v206_v31 = vmul.f32 %v333_v46, %v205_v12  ;;  %v222_v32 = vmul.f32 -0.5, %v420_v58 }
  0x29   : > { %v182_v30 = vsel %vm422_vm1, %v179_v8, %v176_v21  ;;  %v194_v34 = vmul.f32 0.6931472, %v347_v28  ;;  %v215_v35 = vmul.f32 %v335_v53, %v214_v23  ;;  %352 = vlog2.f32 %v219_v27 }
  0x2a   : > { %v228_v36 = vadd.f32 1.0, %v426_v62  ;;  %v349_v37 = vpop.eup %348  ;;  %v191_v38 = vsel %vm428_vm2, %v188_v17, %v185_v24  ;;  %v223_v40 = vadd.f32 1.0, %v222_v32  ;;  %v225_v41 = vand.u32 2147483647, %v420_v58 }
  0x2b   : > { %v231_v42 = vmul.f32 -0.5, %v426_v62  ;;  %v200_v44 = vsel %vm432_vm3, %v197_v25, %v194_v34  ;;  %v203_v45 = vmul.f32 0.6931472, %v349_v37  ;;  %v237_v46 = vadd.f32 %v173_v29, %v125_v33 }
  0x2c   : > { %354 = vlog2.f32 %v228_v36  ;;  %v351_v47 = vpop.eup %350  ;;  %v129_v48 = vmax.f32 %v396_v4, 0.0  ;;  %vm456_vm5 = vcmp.lt.f32.partialorder %v216_v26, 0.0004427343  ;;  %v238_v52 = vadd.f32 %v182_v30, %v126_v39 }
  0x2d   : > { %v232_v51 = vadd.f32 1.0, %v231_v42  ;;  %v209_v53 = vsel %vm436_vm4, %v206_v31, %v203_v45  ;;  %v212_v54 = vmul.f32 0.6931472, %v351_v47  ;;  %v234_v55 = vand.u32 2147483647, %v426_v62 }
  0x2e   : > { %v239_v0 = vadd.f32 %v191_v38, %v127_v43  ;;  %v130_v4 = vmax.f32 %v398_v5, 0.0  ;;  %v224_v33 = vmul.f32 %v420_v58, %v223_v40  ;;  %v240_v1 = vadd.f32 %v200_v44, %v128_v50 }
  0x2f   : > { %v245_v39 = vadd.f32 %v238_v52, %v237_v46  ;;  %v353_v56 = vpop.eup %352  ;;  %v131_v57 = vmax.f32 %v400_v6, 0.0  ;;  %v218_v59 = vsel %vm456_vm5, %v215_v35, %v212_v54  ;;  %vm226_vm6 = vcmp.lt.f32.partialorder %v225_v41, 0.0004427343 }
  0x30   : > { %v221_v2 = vmul.f32 0.6931472, %v353_v56  ;;  %v233_v43 = vmul.f32 %v426_v62, %v232_v51  ;;  %v241_v60 = vadd.f32 %v209_v53, %v129_v48  ;;  %v132_v5 = vmax.f32 %v402_v7, 0.0 }
  0x31   : > { %v246_v61 = vadd.f32 %v245_v39, %v239_v0  ;;  %vm235_vm7 = vcmp.lt.f32.partialorder %v234_v55, 0.0004427343  ;;  %v242_v58 = vadd.f32 %v218_v59, %v130_v4 }
  0x32   : > { %v355_v63 = vpop.eup %354  ;;  %v227_v3 = vsel %vm226_vm6, %v224_v33, %v221_v2 }
  0x33   : > { %v230_v50 = vmul.f32 0.6931472, %v355_v63  ;;  %v247_v8 = vadd.f32 %v246_v61, %v240_v1  ;;  %v243_v9 = vadd.f32 %v227_v3, %v131_v57 }
  0x35   : > { %v236_v6 = vsel %vm235_vm7, %v233_v43, %v230_v50  ;;  %v248_v10 = vadd.f32 %v247_v8, %v241_v60 }
  0x36   : > { %v244_v11 = vadd.f32 %v236_v6, %v132_v5 }
  0x37   : > { %v249_v12 = vadd.f32 %v248_v10, %v242_v58 }
  0x39   : > { %v250_v13 = vadd.f32 %v249_v12, %v243_v9 }
  0x3b   : > { %v251_v62 = vadd.f32 %v250_v13, %v244_v11 }
  0x3d   : > { %252 = vst [vmem:[%s116_s16] sm:$0xff] %v251_v62 }
  0x3e PF: > { %s11_s6 = sadd.s32 1, %s362_s6  }
  0x3f   : > { %p8_p5 = scmp.ge.s32.totalorder %s11_s6, 4  }
  0x41   :  { %10 = sbr.rel (!%p8_p5) target bundleno = 1 (0x1), region = 54 }

</bundles_post_ra>
